<compile_context>
chip_gen: v6e
topology: v6e:2x2x1
jax: 0.10.0
libtpu: 0.0.40
codegen_flags: <defaults>
</compile_context>

<pallas_src>
import jax
import jax.numpy as jnp
from jax.experimental import pallas as pl
from jax.experimental.pallas import tpu as pltpu

IN_DIM = 9          # input features
OUT_DIM = 2         # classes
HIDDEN = 24         # real hidden width
H_PAD = 32          # hidden width padded to a multiple of 8 sublanes
N_LAYERS = 12       # fc1 .. fc12
LANE = 128
TB_MAX = 1024       # batch tile (lanes) per grid step


def mlp_kernel(x_ref, w_ref, b_ref, o_ref):
    # x_ref: (IN_DIM, TB)      batch on lanes
    # w_ref: (12, 32, 32)      packed, zero-padded (out, in) weights, resident
    # b_ref: (12, 32, 1)       packed, zero-padded biases (broadcast over lanes)
    # o_ref: (2, TB)
    x = x_ref[...]                                              # (9, TB)

    # fc1 + ReLU : (32, 9) @ (9, TB)
    h = jnp.dot(w_ref[0, :, :IN_DIM], x,
                preferred_element_type=jnp.float32)
    h = jnp.maximum(h + b_ref[0], 0.0)                          # (32, TB)

    # fc2 .. fc11 + ReLU (dropout1 is identity in eval mode)
    for l in range(1, N_LAYERS - 1):                            # static unroll
        h = jnp.dot(w_ref[l], h, preferred_element_type=jnp.float32)
        h = jnp.maximum(h + b_ref[l], 0.0)

    # fc12 (24 -> 2): valid logits live in rows 0 and 1 of the padded output
    logits = jnp.dot(w_ref[N_LAYERS - 1], h,
                     preferred_element_type=jnp.float32) + b_ref[N_LAYERS - 1]
    l0 = logits[0:1, :]                                         # (1, TB)
    l1 = logits[1:2, :]
    # 2-class softmax == sigmoid of the logit difference (no XLU reduce)
    p0 = 1.0 / (1.0 + jnp.exp(l1 - l0))
    o_ref[0:1, :] = p0.astype(o_ref.dtype)
    o_ref[1:2, :] = (1.0 - p0).astype(o_ref.dtype)


def mymodule7_forward(x, wpack, bpack):
    """x: (B, 9) float32.  wpack: (12, 32, 32).  bpack: (12, 32, 1)."""
    B = x.shape[0]
    # Pad batch up to a lane multiple, then to a tile multiple.
    b_pad = ((B + LANE - 1) // LANE) * LANE
    tb = min(TB_MAX, b_pad)
    b_pad = ((b_pad + tb - 1) // tb) * tb
    n_tiles = b_pad // tb

    # Batch onto the lane axis: (B, 9) -> (9, B_pad), zero-padded.
    xt = jnp.zeros((IN_DIM, b_pad), jnp.float32).at[:, :B].set(x.T)

    out_t = pl.pallas_call(
        mlp_kernel,
        out_shape=jax.ShapeDtypeStruct((OUT_DIM, b_pad), jnp.float32),
        grid=(n_tiles,),
        in_specs=[
            pl.BlockSpec((IN_DIM, tb), lambda i: (0, i)),
            # Constant index_map -> parameters stay VMEM-resident across the grid.
            pl.BlockSpec((N_LAYERS, H_PAD, H_PAD), lambda i: (0, 0, 0)),
            pl.BlockSpec((N_LAYERS, H_PAD, 1), lambda i: (0, 0, 0)),
        ],
        out_specs=pl.BlockSpec((OUT_DIM, tb), lambda i: (0, i)),
        compiler_params=pltpu.CompilerParams(
            dimension_semantics=("parallel",)),
    )(xt, wpack, bpack)

    return out_t[:, :B].T                                       # (B, 2)


def init_params(key):
    """Deterministic xavier-uniform-like init; PyTorch layout w:(out,in), b:(out,)."""
    dims = [(HIDDEN, IN_DIM)] + [(HIDDEN, HIDDEN)] * 10 + [(OUT_DIM, HIDDEN)]
    params = {}
    for i, (fan_out, fan_in) in enumerate(dims, start=1):
        key, wk = jax.random.split(key)
        limit = jnp.sqrt(6.0 / (fan_in + fan_out))
        params[f"w{i}"] = jax.random.uniform(
            wk, (fan_out, fan_in), jnp.float32, minval=-limit, maxval=limit)
        params[f"b{i}"] = jnp.full((fan_out,), 0.01, jnp.float32)
    return params


def pack_params(params):
    """Zero-pad every layer to (32, 32)/(32, 1) and stack into single operands."""
    wpack = jnp.zeros((N_LAYERS, H_PAD, H_PAD), jnp.float32)
    bpack = jnp.zeros((N_LAYERS, H_PAD, 1), jnp.float32)
    for i in range(N_LAYERS):
        w = params[f"w{i + 1}"]            # (out, in)
        b = params[f"b{i + 1}"]            # (out,)
        o, k = w.shape
        wpack = wpack.at[i, :o, :k].set(w)
        bpack = bpack.at[i, :o, 0].set(b)
    return wpack, bpack


def reference_forward(x, params):
    """Pure-JAX reference (eval mode: dropout = identity)."""
    h = x
    for i in range(1, N_LAYERS):           # fc1..fc11 + ReLU
        w, b = params[f"w{i}"], params[f"b{i}"]
        h = jnp.maximum(
            jnp.dot(h, w.T, precision=jax.lax.Precision.HIGHEST) + b, 0.0)
    w, b = params[f"w{N_LAYERS}"], params[f"b{N_LAYERS}"]
    logits = jnp.dot(h, w.T, precision=jax.lax.Precision.HIGHEST) + b
    return jax.nn.softmax(logits, axis=-1)


if __name__ == "__main__":
    key = jax.random.PRNGKey(0)
    key, xk = jax.random.split(key)
    B = 16
    x = jax.random.normal(xk, (B, IN_DIM), jnp.float32)

    params = init_params(key)
    wpack, bpack = pack_params(params)

    out = mymodule7_forward(x, wpack, bpack)
    out = jax.block_until_ready(out)

    ref = reference_forward(x, params)
    assert out.shape == (B, OUT_DIM), out.shape
    # Tolerance allows for MXU multi-pass f32 rounding vs the XLA HIGHEST-precision
    # reference accumulated over 12 layers.
    assert jnp.allclose(out, ref, atol=2e-2, rtol=2e-2), "mismatch vs pure-JAX reference"
    # softmax rows sum to 1
    assert jnp.allclose(jnp.sum(out, axis=-1), jnp.ones((B,)), atol=1e-5)

    print("KERNEL_OK")
</pallas_src>

<mosaic_0001>
module attributes {stable_mosaic.version = 11 : i64} {
  func.func @mlp_kernel(%arg0: i32, %arg1: memref<9x128xf32, #tpu.memory_space<vmem>>, %arg2: memref<12x32x32xf32, #tpu.memory_space<vmem>>, %arg3: memref<12x32x1xf32, #tpu.memory_space<vmem>>, %arg4: memref<2x128xf32, #tpu.memory_space<vmem>>) attributes {dimension_semantics = [#tpu.dimension_semantics<parallel>], iteration_bounds = array<i64: 1>, scalar_prefetch = 0 : i64, scratch_operands = 0 : i64, tpu.core_type = #tpu.core_type<tc>, window_params = [{transform_indices = @transform_0, window_bounds = array<i64: 9, 128>}, {pipeline_mode = #tpu.pipeline_mode<synchronous>, transform_indices = @transform_1, window_bounds = array<i64: 12, 32, 32>}, {pipeline_mode = #tpu.pipeline_mode<synchronous>, transform_indices = @transform_2, window_bounds = array<i64: 12, 32, 1>}, {transform_indices = @transform_3, window_bounds = array<i64: 2, 128>}]} {
    %c0 = arith.constant 0 : index
    %c0_0 = arith.constant 0 : index
    %0 = vector.load %arg1[%c0, %c0_0] : memref<9x128xf32, #tpu.memory_space<vmem>>, vector<9x128xf32>
    %c0_1 = arith.constant 0 : index
    %c0_2 = arith.constant 0 : index
    %c0_3 = arith.constant 0 : index
    %1 = vector.load %arg2[%c0_1, %c0_2, %c0_3] : memref<12x32x32xf32, #tpu.memory_space<vmem>>, vector<1x32x9xf32>
    %2 = vector.shape_cast %1 : vector<1x32x9xf32> to vector<32x9xf32>
    %cst = arith.constant dense<0.000000e+00> : vector<32x128xf32>
    %3 = tpu.matmul %2, %0, %cst {dimension_numbers = #tpu.dot_dimension_numbers<[1], [0], [0], [1], [0, 0, 1, 1], [], []>} : vector<32x9xf32>, vector<9x128xf32>, vector<32x128xf32> -> vector<32x128xf32>
    %c0_4 = arith.constant 0 : index
    %c0_5 = arith.constant 0 : index
    %c0_6 = arith.constant 0 : index
    %4 = vector.load %arg3[%c0_4, %c0_5, %c0_6] : memref<12x32x1xf32, #tpu.memory_space<vmem>>, vector<1x32x1xf32>
    %5 = vector.shape_cast %4 : vector<1x32x1xf32> to vector<32x1xf32>
    %6 = vector.broadcast %5 : vector<32x1xf32> to vector<32x128xf32>
    %7 = arith.addf %3, %6 : vector<32x128xf32>
    %cst_7 = arith.constant 0.000000e+00 : f32
    %8 = vector.broadcast %cst_7 : f32 to vector<32x128xf32>
    %9 = arith.maximumf %7, %8 : vector<32x128xf32>
    %c1 = arith.constant 1 : index
    %c0_8 = arith.constant 0 : index
    %c0_9 = arith.constant 0 : index
    %10 = vector.load %arg2[%c1, %c0_8, %c0_9] : memref<12x32x32xf32, #tpu.memory_space<vmem>>, vector<1x32x32xf32>
    %11 = vector.shape_cast %10 : vector<1x32x32xf32> to vector<32x32xf32>
    %cst_10 = arith.constant dense<0.000000e+00> : vector<32x128xf32>
    %12 = tpu.matmul %11, %9, %cst_10 {dimension_numbers = #tpu.dot_dimension_numbers<[1], [0], [0], [1], [0, 0, 1, 1], [], []>} : vector<32x32xf32>, vector<32x128xf32>, vector<32x128xf32> -> vector<32x128xf32>
    %c1_11 = arith.constant 1 : index
    %c0_12 = arith.constant 0 : index
    %c0_13 = arith.constant 0 : index
    %13 = vector.load %arg3[%c1_11, %c0_12, %c0_13] : memref<12x32x1xf32, #tpu.memory_space<vmem>>, vector<1x32x1xf32>
    %14 = vector.shape_cast %13 : vector<1x32x1xf32> to vector<32x1xf32>
    %15 = vector.broadcast %14 : vector<32x1xf32> to vector<32x128xf32>
    %16 = arith.addf %12, %15 : vector<32x128xf32>
    %cst_14 = arith.constant 0.000000e+00 : f32
    %17 = vector.broadcast %cst_14 : f32 to vector<32x128xf32>
    %18 = arith.maximumf %16, %17 : vector<32x128xf32>
    %c2 = arith.constant 2 : index
    %c0_15 = arith.constant 0 : index
    %c0_16 = arith.constant 0 : index
    %19 = vector.load %arg2[%c2, %c0_15, %c0_16] : memref<12x32x32xf32, #tpu.memory_space<vmem>>, vector<1x32x32xf32>
    %20 = vector.shape_cast %19 : vector<1x32x32xf32> to vector<32x32xf32>
    %cst_17 = arith.constant dense<0.000000e+00> : vector<32x128xf32>
    %21 = tpu.matmul %20, %18, %cst_17 {dimension_numbers = #tpu.dot_dimension_numbers<[1], [0], [0], [1], [0, 0, 1, 1], [], []>} : vector<32x32xf32>, vector<32x128xf32>, vector<32x128xf32> -> vector<32x128xf32>
    %c2_18 = arith.constant 2 : index
    %c0_19 = arith.constant 0 : index
    %c0_20 = arith.constant 0 : index
    %22 = vector.load %arg3[%c2_18, %c0_19, %c0_20] : memref<12x32x1xf32, #tpu.memory_space<vmem>>, vector<1x32x1xf32>
    %23 = vector.shape_cast %22 : vector<1x32x1xf32> to vector<32x1xf32>
    %24 = vector.broadcast %23 : vector<32x1xf32> to vector<32x128xf32>
    %25 = arith.addf %21, %24 : vector<32x128xf32>
    %cst_21 = arith.constant 0.000000e+00 : f32
    %26 = vector.broadcast %cst_21 : f32 to vector<32x128xf32>
    %27 = arith.maximumf %25, %26 : vector<32x128xf32>
    %c3 = arith.constant 3 : index
    %c0_22 = arith.constant 0 : index
    %c0_23 = arith.constant 0 : index
    %28 = vector.load %arg2[%c3, %c0_22, %c0_23] : memref<12x32x32xf32, #tpu.memory_space<vmem>>, vector<1x32x32xf32>
    %29 = vector.shape_cast %28 : vector<1x32x32xf32> to vector<32x32xf32>
    %cst_24 = arith.constant dense<0.000000e+00> : vector<32x128xf32>
    %30 = tpu.matmul %29, %27, %cst_24 {dimension_numbers = #tpu.dot_dimension_numbers<[1], [0], [0], [1], [0, 0, 1, 1], [], []>} : vector<32x32xf32>, vector<32x128xf32>, vector<32x128xf32> -> vector<32x128xf32>
    %c3_25 = arith.constant 3 : index
    %c0_26 = arith.constant 0 : index
    %c0_27 = arith.constant 0 : index
    %31 = vector.load %arg3[%c3_25, %c0_26, %c0_27] : memref<12x32x1xf32, #tpu.memory_space<vmem>>, vector<1x32x1xf32>
    %32 = vector.shape_cast %31 : vector<1x32x1xf32> to vector<32x1xf32>
    %33 = vector.broadcast %32 : vector<32x1xf32> to vector<32x128xf32>
    %34 = arith.addf %30, %33 : vector<32x128xf32>
    %cst_28 = arith.constant 0.000000e+00 : f32
    %35 = vector.broadcast %cst_28 : f32 to vector<32x128xf32>
    %36 = arith.maximumf %34, %35 : vector<32x128xf32>
    %c4 = arith.constant 4 : index
    %c0_29 = arith.constant 0 : index
    %c0_30 = arith.constant 0 : index
    %37 = vector.load %arg2[%c4, %c0_29, %c0_30] : memref<12x32x32xf32, #tpu.memory_space<vmem>>, vector<1x32x32xf32>
    %38 = vector.shape_cast %37 : vector<1x32x32xf32> to vector<32x32xf32>
    %cst_31 = arith.constant dense<0.000000e+00> : vector<32x128xf32>
    %39 = tpu.matmul %38, %36, %cst_31 {dimension_numbers = #tpu.dot_dimension_numbers<[1], [0], [0], [1], [0, 0, 1, 1], [], []>} : vector<32x32xf32>, vector<32x128xf32>, vector<32x128xf32> -> vector<32x128xf32>
    %c4_32 = arith.constant 4 : index
    %c0_33 = arith.constant 0 : index
    %c0_34 = arith.constant 0 : index
    %40 = vector.load %arg3[%c4_32, %c0_33, %c0_34] : memref<12x32x1xf32, #tpu.memory_space<vmem>>, vector<1x32x1xf32>
    %41 = vector.shape_cast %40 : vector<1x32x1xf32> to vector<32x1xf32>
    %42 = vector.broadcast %41 : vector<32x1xf32> to vector<32x128xf32>
    %43 = arith.addf %39, %42 : vector<32x128xf32>
    %cst_35 = arith.constant 0.000000e+00 : f32
    %44 = vector.broadcast %cst_35 : f32 to vector<32x128xf32>
    %45 = arith.maximumf %43, %44 : vector<32x128xf32>
    %c5 = arith.constant 5 : index
    %c0_36 = arith.constant 0 : index
    %c0_37 = arith.constant 0 : index
    %46 = vector.load %arg2[%c5, %c0_36, %c0_37] : memref<12x32x32xf32, #tpu.memory_space<vmem>>, vector<1x32x32xf32>
    %47 = vector.shape_cast %46 : vector<1x32x32xf32> to vector<32x32xf32>
    %cst_38 = arith.constant dense<0.000000e+00> : vector<32x128xf32>
    %48 = tpu.matmul %47, %45, %cst_38 {dimension_numbers = #tpu.dot_dimension_numbers<[1], [0], [0], [1], [0, 0, 1, 1], [], []>} : vector<32x32xf32>, vector<32x128xf32>, vector<32x128xf32> -> vector<32x128xf32>
    %c5_39 = arith.constant 5 : index
    %c0_40 = arith.constant 0 : index
    %c0_41 = arith.constant 0 : index
    %49 = vector.load %arg3[%c5_39, %c0_40, %c0_41] : memref<12x32x1xf32, #tpu.memory_space<vmem>>, vector<1x32x1xf32>
    %50 = vector.shape_cast %49 : vector<1x32x1xf32> to vector<32x1xf32>
    %51 = vector.broadcast %50 : vector<32x1xf32> to vector<32x128xf32>
    %52 = arith.addf %48, %51 : vector<32x128xf32>
    %cst_42 = arith.constant 0.000000e+00 : f32
    %53 = vector.broadcast %cst_42 : f32 to vector<32x128xf32>
    %54 = arith.maximumf %52, %53 : vector<32x128xf32>
    %c6 = arith.constant 6 : index
    %c0_43 = arith.constant 0 : index
    %c0_44 = arith.constant 0 : index
    %55 = vector.load %arg2[%c6, %c0_43, %c0_44] : memref<12x32x32xf32, #tpu.memory_space<vmem>>, vector<1x32x32xf32>
    %56 = vector.shape_cast %55 : vector<1x32x32xf32> to vector<32x32xf32>
    %cst_45 = arith.constant dense<0.000000e+00> : vector<32x128xf32>
    %57 = tpu.matmul %56, %54, %cst_45 {dimension_numbers = #tpu.dot_dimension_numbers<[1], [0], [0], [1], [0, 0, 1, 1], [], []>} : vector<32x32xf32>, vector<32x128xf32>, vector<32x128xf32> -> vector<32x128xf32>
    %c6_46 = arith.constant 6 : index
    %c0_47 = arith.constant 0 : index
    %c0_48 = arith.constant 0 : index
    %58 = vector.load %arg3[%c6_46, %c0_47, %c0_48] : memref<12x32x1xf32, #tpu.memory_space<vmem>>, vector<1x32x1xf32>
    %59 = vector.shape_cast %58 : vector<1x32x1xf32> to vector<32x1xf32>
    %60 = vector.broadcast %59 : vector<32x1xf32> to vector<32x128xf32>
    %61 = arith.addf %57, %60 : vector<32x128xf32>
    %cst_49 = arith.constant 0.000000e+00 : f32
    %62 = vector.broadcast %cst_49 : f32 to vector<32x128xf32>
    %63 = arith.maximumf %61, %62 : vector<32x128xf32>
    %c7 = arith.constant 7 : index
    %c0_50 = arith.constant 0 : index
    %c0_51 = arith.constant 0 : index
    %64 = vector.load %arg2[%c7, %c0_50, %c0_51] : memref<12x32x32xf32, #tpu.memory_space<vmem>>, vector<1x32x32xf32>
    %65 = vector.shape_cast %64 : vector<1x32x32xf32> to vector<32x32xf32>
    %cst_52 = arith.constant dense<0.000000e+00> : vector<32x128xf32>
    %66 = tpu.matmul %65, %63, %cst_52 {dimension_numbers = #tpu.dot_dimension_numbers<[1], [0], [0], [1], [0, 0, 1, 1], [], []>} : vector<32x32xf32>, vector<32x128xf32>, vector<32x128xf32> -> vector<32x128xf32>
    %c7_53 = arith.constant 7 : index
    %c0_54 = arith.constant 0 : index
    %c0_55 = arith.constant 0 : index
    %67 = vector.load %arg3[%c7_53, %c0_54, %c0_55] : memref<12x32x1xf32, #tpu.memory_space<vmem>>, vector<1x32x1xf32>
    %68 = vector.shape_cast %67 : vector<1x32x1xf32> to vector<32x1xf32>
    %69 = vector.broadcast %68 : vector<32x1xf32> to vector<32x128xf32>
    %70 = arith.addf %66, %69 : vector<32x128xf32>
    %cst_56 = arith.constant 0.000000e+00 : f32
    %71 = vector.broadcast %cst_56 : f32 to vector<32x128xf32>
    %72 = arith.maximumf %70, %71 : vector<32x128xf32>
    %c8 = arith.constant 8 : index
    %c0_57 = arith.constant 0 : index
    %c0_58 = arith.constant 0 : index
    %73 = vector.load %arg2[%c8, %c0_57, %c0_58] : memref<12x32x32xf32, #tpu.memory_space<vmem>>, vector<1x32x32xf32>
    %74 = vector.shape_cast %73 : vector<1x32x32xf32> to vector<32x32xf32>
    %cst_59 = arith.constant dense<0.000000e+00> : vector<32x128xf32>
    %75 = tpu.matmul %74, %72, %cst_59 {dimension_numbers = #tpu.dot_dimension_numbers<[1], [0], [0], [1], [0, 0, 1, 1], [], []>} : vector<32x32xf32>, vector<32x128xf32>, vector<32x128xf32> -> vector<32x128xf32>
    %c8_60 = arith.constant 8 : index
    %c0_61 = arith.constant 0 : index
    %c0_62 = arith.constant 0 : index
    %76 = vector.load %arg3[%c8_60, %c0_61, %c0_62] : memref<12x32x1xf32, #tpu.memory_space<vmem>>, vector<1x32x1xf32>
    %77 = vector.shape_cast %76 : vector<1x32x1xf32> to vector<32x1xf32>
    %78 = vector.broadcast %77 : vector<32x1xf32> to vector<32x128xf32>
    %79 = arith.addf %75, %78 : vector<32x128xf32>
    %cst_63 = arith.constant 0.000000e+00 : f32
    %80 = vector.broadcast %cst_63 : f32 to vector<32x128xf32>
    %81 = arith.maximumf %79, %80 : vector<32x128xf32>
    %c9 = arith.constant 9 : index
    %c0_64 = arith.constant 0 : index
    %c0_65 = arith.constant 0 : index
    %82 = vector.load %arg2[%c9, %c0_64, %c0_65] : memref<12x32x32xf32, #tpu.memory_space<vmem>>, vector<1x32x32xf32>
    %83 = vector.shape_cast %82 : vector<1x32x32xf32> to vector<32x32xf32>
    %cst_66 = arith.constant dense<0.000000e+00> : vector<32x128xf32>
    %84 = tpu.matmul %83, %81, %cst_66 {dimension_numbers = #tpu.dot_dimension_numbers<[1], [0], [0], [1], [0, 0, 1, 1], [], []>} : vector<32x32xf32>, vector<32x128xf32>, vector<32x128xf32> -> vector<32x128xf32>
    %c9_67 = arith.constant 9 : index
    %c0_68 = arith.constant 0 : index
    %c0_69 = arith.constant 0 : index
    %85 = vector.load %arg3[%c9_67, %c0_68, %c0_69] : memref<12x32x1xf32, #tpu.memory_space<vmem>>, vector<1x32x1xf32>
    %86 = vector.shape_cast %85 : vector<1x32x1xf32> to vector<32x1xf32>
    %87 = vector.broadcast %86 : vector<32x1xf32> to vector<32x128xf32>
    %88 = arith.addf %84, %87 : vector<32x128xf32>
    %cst_70 = arith.constant 0.000000e+00 : f32
    %89 = vector.broadcast %cst_70 : f32 to vector<32x128xf32>
    %90 = arith.maximumf %88, %89 : vector<32x128xf32>
    %c10 = arith.constant 10 : index
    %c0_71 = arith.constant 0 : index
    %c0_72 = arith.constant 0 : index
    %91 = vector.load %arg2[%c10, %c0_71, %c0_72] : memref<12x32x32xf32, #tpu.memory_space<vmem>>, vector<1x32x32xf32>
    %92 = vector.shape_cast %91 : vector<1x32x32xf32> to vector<32x32xf32>
    %cst_73 = arith.constant dense<0.000000e+00> : vector<32x128xf32>
    %93 = tpu.matmul %92, %90, %cst_73 {dimension_numbers = #tpu.dot_dimension_numbers<[1], [0], [0], [1], [0, 0, 1, 1], [], []>} : vector<32x32xf32>, vector<32x128xf32>, vector<32x128xf32> -> vector<32x128xf32>
    %c10_74 = arith.constant 10 : index
    %c0_75 = arith.constant 0 : index
    %c0_76 = arith.constant 0 : index
    %94 = vector.load %arg3[%c10_74, %c0_75, %c0_76] : memref<12x32x1xf32, #tpu.memory_space<vmem>>, vector<1x32x1xf32>
    %95 = vector.shape_cast %94 : vector<1x32x1xf32> to vector<32x1xf32>
    %96 = vector.broadcast %95 : vector<32x1xf32> to vector<32x128xf32>
    %97 = arith.addf %93, %96 : vector<32x128xf32>
    %cst_77 = arith.constant 0.000000e+00 : f32
    %98 = vector.broadcast %cst_77 : f32 to vector<32x128xf32>
    %99 = arith.maximumf %97, %98 : vector<32x128xf32>
    %c11 = arith.constant 11 : index
    %c0_78 = arith.constant 0 : index
    %c0_79 = arith.constant 0 : index
    %100 = vector.load %arg2[%c11, %c0_78, %c0_79] : memref<12x32x32xf32, #tpu.memory_space<vmem>>, vector<1x32x32xf32>
    %101 = vector.shape_cast %100 : vector<1x32x32xf32> to vector<32x32xf32>
    %cst_80 = arith.constant dense<0.000000e+00> : vector<32x128xf32>
    %102 = tpu.matmul %101, %99, %cst_80 {dimension_numbers = #tpu.dot_dimension_numbers<[1], [0], [0], [1], [0, 0, 1, 1], [], []>} : vector<32x32xf32>, vector<32x128xf32>, vector<32x128xf32> -> vector<32x128xf32>
    %c11_81 = arith.constant 11 : index
    %c0_82 = arith.constant 0 : index
    %c0_83 = arith.constant 0 : index
    %103 = vector.load %arg3[%c11_81, %c0_82, %c0_83] : memref<12x32x1xf32, #tpu.memory_space<vmem>>, vector<1x32x1xf32>
    %104 = vector.shape_cast %103 : vector<1x32x1xf32> to vector<32x1xf32>
    %105 = vector.broadcast %104 : vector<32x1xf32> to vector<32x128xf32>
    %106 = arith.addf %102, %105 : vector<32x128xf32>
    %107 = vector.extract_strided_slice %106 {offsets = [0, 0], sizes = [1, 128], strides = [1, 1]} : vector<32x128xf32> to vector<1x128xf32>
    %108 = vector.extract_strided_slice %106 {offsets = [1, 0], sizes = [1, 128], strides = [1, 1]} : vector<32x128xf32> to vector<1x128xf32>
    %109 = arith.subf %108, %107 : vector<1x128xf32>
    %110 = math.exp %109 : vector<1x128xf32>
    %cst_84 = arith.constant 1.000000e+00 : f32
    %111 = vector.broadcast %cst_84 : f32 to vector<1x128xf32>
    %112 = arith.addf %111, %110 : vector<1x128xf32>
    %cst_85 = arith.constant 1.000000e+00 : f32
    %113 = vector.broadcast %cst_85 : f32 to vector<1x128xf32>
    %114 = arith.divf %113, %112 : vector<1x128xf32>
    %c0_86 = arith.constant 0 : index
    %c0_87 = arith.constant 0 : index
    %115 = vector.load %arg4[%c0_86, %c0_87] : memref<2x128xf32, #tpu.memory_space<vmem>>, vector<1x128xf32>
    tpu.vector_store %arg4[%c0_86, %c0_87], %114 {strides = array<i32>} : memref<2x128xf32, #tpu.memory_space<vmem>>, vector<1x128xf32>,
    %cst_88 = arith.constant 1.000000e+00 : f32
    %116 = vector.broadcast %cst_88 : f32 to vector<1x128xf32>
    %117 = arith.subf %116, %114 : vector<1x128xf32>
    %c1_89 = arith.constant 1 : index
    %c0_90 = arith.constant 0 : index
    %118 = vector.load %arg4[%c1_89, %c0_90] : memref<2x128xf32, #tpu.memory_space<vmem>>, vector<1x128xf32>
    tpu.vector_store %arg4[%c1_89, %c0_90], %117 {strides = array<i32>} : memref<2x128xf32, #tpu.memory_space<vmem>>, vector<1x128xf32>,
    return
  }
  func.func @transform_0(%arg0: i32) -> (i32, i32) {
    %c0_i32 = arith.constant 0 : i32
    %c0_i32_0 = arith.constant 0 : i32
    return %c0_i32, %arg0 : i32, i32
  }
  func.func @transform_1(%arg0: i32) -> (i32, i32, i32) {
    %c0_i32 = arith.constant 0 : i32
    %c0_i32_0 = arith.constant 0 : i32
    %c0_i32_1 = arith.constant 0 : i32
    %c0_i32_2 = arith.constant 0 : i32
    return %c0_i32, %c0_i32_0, %c0_i32_1 : i32, i32, i32
  }
  func.func @transform_2(%arg0: i32) -> (i32, i32, i32) {
    %c0_i32 = arith.constant 0 : i32
    %c0_i32_0 = arith.constant 0 : i32
    %c0_i32_1 = arith.constant 0 : i32
    %c0_i32_2 = arith.constant 0 : i32
    return %c0_i32, %c0_i32_0, %c0_i32_1 : i32, i32, i32
  }
  func.func @transform_3(%arg0: i32) -> (i32, i32) {
    %c0_i32 = arith.constant 0 : i32
    %c0_i32_0 = arith.constant 0 : i32
    return %c0_i32, %arg0 : i32, i32
  }
}

</mosaic_0001>

<bundles_post_ra>
// kernel: tpu_custom_call.1
= control target key start
LH: loop header
LB: loop body
LE: loop exit
PB: predicated region body
PF: predicated region fallthrough
CT: control target
= control target key end

     0   :  { %8 = vsyncpa [#allocation3], 0  ;;  %s2432_s0 = inlined_call_operand.hbm [shape: f32[9,128], index: 0, kind: input, shape index: {}]   ;;  %s2433_s1 = inlined_call_operand.vmem [shape: f32[12,32,32], index: 1, kind: input, shape index: {}]   ;;  %s2434_s2 = inlined_call_operand.vmem [shape: f32[12,32,1], index: 2, kind: input, shape index: {}]   ;;  %s2435_s3 = inlined_call_operand.hbm [shape: f32[2,128], index: 3, kind: output, shape index: {}]  }
   0x1   :  { %9 = vsyncpa [#allocation4], 0  ;;  %s2074_s12 = smov [#allocation2]  }
   0x2   :  { %s15_s13 = sshll.u32 %s2074_s12, 4  ;;  %s16_s13 = int_to_ptr.vmem [resolvable:$true] %s15_s13 }
   0x3   :  { %s2038_s14 = scalar_lea.vmem %s16_s13, 256  ;;  %p2043_p1 = scmp.lt.s32.totalorder %s16_s13, %s16_s13 }
   0x4   :  { %p2039_p0 = scmp.ne.s32.totalorder %s16_s13, %s2038_s14  ;;  %p2044_p2 = scmp.lt.s32.totalorder %s2038_s14, %s2038_s14 }
   0x6   :  { %p2045_p3 = por %p2044_p2, %p2043_p1 }
   0x8   :  { %p2046_p4 = pnand %p2045_p3, %p2039_p0 }
   0xa   :  { %2049 = shalt.err (!%p2046_p4)
}
   0xb   :  { %s2075_s15 = smov 128   ;;  %s2076_s16 = smov 8  }
   0xc   :  { %21 = dma.hbm_to_vmem [thread:$0]  %s2432_s0, 256, %s16_s13, [#allocation3], %s2075_s15, %s2075_s15, %s2076_s16  }
   0xd   :  { %2070 = dma.done.wait [#allocation3], 256  }
   0xe   :  { %2071 = vsyncadd [#allocation3], 4294967040  ;;  %v2077_v0 = vmov 0   ;;  %vm72_vm0 = vcmask 1040384   ;;  %vm59_vm1 = vcmask 72704   ;;  %v38_v1 = vld [vmem:[%s2434_s2 + $0x18] sm:$0xff] }
   0xf   :  { %2025 = vset.pattern.permute.xlu1 %v2077_v0  ;;  %2024 = vset.pattern.permute.xlu0 %v2077_v0  ;;  %v36_v2 = vld [vmem:[%s2434_s2 + $0x8] sm:$0xff]  ;;  %v29_v4 = vld [vmem:[#allocation2] sm:$0xff]  ;;  %v37_v6 = vld [vmem:[%s2434_s2 + $0x10] sm:$0xff]  ;;  %vm195_vm2 = vcmask 261120   ;;  %s2078_s6 = smov [#allocation5]  }
  0x10   :  { %v30_v3 = vld [vmem:[#allocation2 + $0x8] sm:$0x1]  ;;  %56 = vperm.xlu0 %2024, %v38_v1   ;;  %46 = vperm.xlu1 %2025, %v36_v2   ;;  %v31_v5 = vld [vmem:[%s2433_s1] sm:$0xff]  ;;  %v33_v9 = vld [vmem:[%s2433_s1 + $0x10] sm:$0xff] }
  0x11   :  { %1855 = vmatprep.subr.msk.mxu0 %vm72_vm0, %v30_v3  ;;  %1859 = vmatprep.mubr.msk.f32.mxu0 %vm59_vm1, %v31_v5  ;;  %v35_v7 = vld [vmem:[%s2434_s2] sm:$0xff]  ;;  %v32_v8 = vld [vmem:[%s2433_s1 + $0x8] sm:$0xff]  ;;  %v1636_v10 = vld [vmem:[%s2434_s2 + $0x38] sm:$0xff] }
  0x12   :  { %1856 = vmatpush3.msk.msra.mxu0 %vm72_vm0, %v30_v3  ;;  %v1635_v11 = vld [vmem:[%s2434_s2 + $0x30] sm:$0xff]  ;;  %v34_v12 = vld [vmem:[%s2433_s1 + $0x18] sm:$0xff]  ;;  %v1634_v13 = vld [vmem:[%s2434_s2 + $0x28] sm:$0xff] }
  0x13   :  { %1857 = vmatprep.subr.mxu0 %v29_v4  ;;  %v1633_v14 = vld [vmem:[%s2434_s2 + $0x20] sm:$0xff]  ;;  %v1648_v15 = vld [vmem:[%s2434_s2 + $0x58] sm:$0xff]  ;;  %v1647_v16 = vld [vmem:[%s2434_s2 + $0x50] sm:$0xff] }
  0x14   :  { %1858 = vmatpush3.msra.mxu0 %v29_v4  ;;  %51 = vperm.xlu0 %2024, %v37_v6   ;;  %v1646_v17 = vld [vmem:[%s2434_s2 + $0x48] sm:$0xff]  ;;  %v1645_v18 = vld [vmem:[%s2434_s2 + $0x40] sm:$0xff]  ;;  %v1660_v19 = vld [vmem:[%s2434_s2 + $0x78] sm:$0xff] }
  0x15   :  { %41 = vperm.xlu1 %2025, %v35_v7   ;;  %1860 = vmatmul.mubr.msk.f32.vlgmr.msra.gmra.mxu0 %vm59_vm1, %v32_v8  ;;  %v1659_v20 = vld [vmem:[%s2434_s2 + $0x70] sm:$0xff]  ;;  %v1658_v21 = vld [vmem:[%s2434_s2 + $0x68] sm:$0xff]  ;;  %v1657_v22 = vld [vmem:[%s2434_s2 + $0x60] sm:$0xff] }
  0x16   :  { %1862 = vmatprep.mubr.msk.f32.mxu0 %vm59_vm1, %v33_v9  ;;  %v1672_v23 = vld [vmem:[%s2434_s2 + $0x98] sm:$0xff]  ;;  %v1671_v24 = vld [vmem:[%s2434_s2 + $0x90] sm:$0xff]  ;;  %v1670_v25 = vld [vmem:[%s2434_s2 + $0x88] sm:$0xff] }
  0x17   :  { %v1669_v26 = vld [vmem:[%s2434_s2 + $0x80] sm:$0xff]  ;;  %v1684_v27 = vld [vmem:[%s2434_s2 + $0xb8] sm:$0xff]  ;;  %v1683_v28 = vld [vmem:[%s2434_s2 + $0xb0] sm:$0xff] }
  0x18   :  { %192 = vperm.xlu0 %2024, %v1636_v10   ;;  %v1682_v29 = vld [vmem:[%s2434_s2 + $0xa8] sm:$0xff]  ;;  %v1681_v30 = vld [vmem:[%s2434_s2 + $0xa0] sm:$0xff]  ;;  %v1696_v31 = vld [vmem:[%s2434_s2 + $0xd8] sm:$0xff] }
  0x19   :  { %187 = vperm.xlu1 %2025, %v1635_v11   ;;  %1863 = vmatmul.mubr.msk.f32.gmra.mxu0 %vm59_vm1, %v34_v12  ;;  %v1695_v32 = vld [vmem:[%s2434_s2 + $0xd0] sm:$0xff]  ;;  %v1694_v33 = vld [vmem:[%s2434_s2 + $0xc8] sm:$0xff]  ;;  %v1693_v34 = vld [vmem:[%s2434_s2 + $0xc0] sm:$0xff] }
  0x1a   :  { %v1708_v35 = vld [vmem:[%s2434_s2 + $0xf8] sm:$0xff]  ;;  %v1707_v36 = vld [vmem:[%s2434_s2 + $0xf0] sm:$0xff]  ;;  %v1706_v37 = vld [vmem:[%s2434_s2 + $0xe8] sm:$0xff] }
  0x1b   :  { %v1705_v38 = vld [vmem:[%s2434_s2 + $0xe0] sm:$0xff]  ;;  %v1720_v39 = vld [vmem:[%s2434_s2 + $0x118] sm:$0xff]  ;;  %v1719_v40 = vld [vmem:[%s2434_s2 + $0x110] sm:$0xff] }
  0x1c   :  { %182 = vperm.xlu0 %2024, %v1634_v13   ;;  %v1718_v41 = vld [vmem:[%s2434_s2 + $0x108] sm:$0xff]  ;;  %v1717_v42 = vld [vmem:[%s2434_s2 + $0x100] sm:$0xff]  ;;  %v1732_v43 = vld [vmem:[%s2434_s2 + $0x138] sm:$0xff] }
  0x1d   :  { %177 = vperm.xlu1 %2025, %v1633_v14   ;;  %v1731_v44 = vld [vmem:[%s2434_s2 + $0x130] sm:$0xff]  ;;  %v1730_v45 = vld [vmem:[%s2434_s2 + $0x128] sm:$0xff]  ;;  %v1729_v46 = vld [vmem:[%s2434_s2 + $0x120] sm:$0xff] }
  0x1e   :  { %v1744_v47 = vld [vmem:[%s2434_s2 + $0x158] sm:$0xff]  ;;  %v1743_v48 = vld [vmem:[%s2434_s2 + $0x150] sm:$0xff]  ;;  %v1742_v49 = vld [vmem:[%s2434_s2 + $0x148] sm:$0xff] }
  0x1f   :  { %v1741_v50 = vld [vmem:[%s2434_s2 + $0x140] sm:$0xff]  ;;  %v1630_v5 = vld [vmem:[%s2433_s1 + $0x28] sm:$0xff]  ;;  %v1631_v6 = vld [vmem:[%s2433_s1 + $0x30] sm:$0xff] }
  0x20   :  { %324 = vperm.xlu0 %2024, %v1648_v15   ;;  %v1629_v51 = vld [vmem:[%s2433_s1 + $0x20] sm:$0xff]  ;;  %v1632_v7 = vld [vmem:[%s2433_s1 + $0x38] sm:$0xff] }
  0x21   :  { %319 = vperm.xlu1 %2025, %v1647_v16   ;;  %v1753_v52 = vld [vmem:[%s2434_s2 + $0x160] sm:$0xff]  ;;  %1873 = vmatprep.mubr.msk.f32.mxu1 %vm195_vm2, %v1629_v51  ;;  %s1615_s2 = sshll.u32 %s2078_s6, 4  ;;  %s1616_s2 = int_to_ptr.vmem [resolvable:$true] %s1615_s2 }
  0x22   :  { %v1641_v8 = vld [vmem:[%s2433_s1 + $0x40] sm:$0xff]  ;;  %p2055_p6 = scmp.lt.s32.totalorder %s1616_s2, %s1616_s2 }
  0x23   :  { %1887 = vmatprep.mubr.msk.f32.mxu0 %vm195_vm2, %v1641_v8 }
  0x24   :  { %314 = vperm.xlu0 %2024, %v1646_v17  }
  0x25   :  { %309 = vperm.xlu1 %2025, %v1645_v18  }
  0x28   :  { %455 = vperm.xlu0 %2024, %v1660_v19  }
  0x29   :  { %450 = vperm.xlu1 %2025, %v1659_v20  }
  0x2c   :  { %445 = vperm.xlu0 %2024, %v1658_v21  }
  0x2d   :  { %440 = vperm.xlu1 %2025, %v1657_v22  }
  0x30   :  { %586 = vperm.xlu0 %2024, %v1672_v23  }
  0x31   :  { %581 = vperm.xlu1 %2025, %v1671_v24  }
  0x34   :  { %576 = vperm.xlu0 %2024, %v1670_v25   ;;  %v1642_v25 = vld [vmem:[%s2433_s1 + $0x48] sm:$0xff] }
  0x35   :  { %571 = vperm.xlu1 %2025, %v1669_v26   ;;  %v1643_v26 = vld [vmem:[%s2433_s1 + $0x50] sm:$0xff] }
  0x38   :  { %717 = vperm.xlu0 %2024, %v1684_v27   ;;  %v1644_v27 = vld [vmem:[%s2433_s1 + $0x58] sm:$0xff] }
  0x39   :  { %712 = vperm.xlu1 %2025, %v1683_v28   ;;  %v1653_v28 = vld [vmem:[%s2433_s1 + $0x60] sm:$0xff] }
  0x3c   :  { %707 = vperm.xlu0 %2024, %v1682_v29  }
  0x3d   :  { %702 = vperm.xlu1 %2025, %v1681_v30  }
  0x40   :  { %848 = vperm.xlu0 %2024, %v1696_v31  }
  0x41   :  { %843 = vperm.xlu1 %2025, %v1695_v32  }
  0x44   :  { %838 = vperm.xlu0 %2024, %v1694_v33  }
  0x45   :  { %833 = vperm.xlu1 %2025, %v1693_v34  }
  0x48   :  { %979 = vperm.xlu0 %2024, %v1708_v35  }
  0x49   :  { %974 = vperm.xlu1 %2025, %v1707_v36  }
  0x4c   :  { %969 = vperm.xlu0 %2024, %v1706_v37  }
  0x4d   :  { %964 = vperm.xlu1 %2025, %v1705_v38  }
  0x50   :  { %1110 = vperm.xlu0 %2024, %v1720_v39  }
  0x51   :  { %1105 = vperm.xlu1 %2025, %v1719_v40  }
  0x54   :  { %1100 = vperm.xlu0 %2024, %v1718_v41  }
  0x55   :  { %1095 = vperm.xlu1 %2025, %v1717_v42  }
  0x58   :  { %1241 = vperm.xlu0 %2024, %v1732_v43  }
  0x59   :  { %1236 = vperm.xlu1 %2025, %v1731_v44  }
  0x5c   :  { %1231 = vperm.xlu0 %2024, %v1730_v45   ;;  %v1654_v45 = vld [vmem:[%s2433_s1 + $0x68] sm:$0xff] }
  0x5d   :  { %1226 = vperm.xlu1 %2025, %v1729_v46   ;;  %v1655_v46 = vld [vmem:[%s2433_s1 + $0x70] sm:$0xff] }
  0x60   :  { %1372 = vperm.xlu0 %2024, %v1744_v47   ;;  %v1656_v47 = vld [vmem:[%s2433_s1 + $0x78] sm:$0xff] }
  0x61   :  { %1367 = vperm.xlu1 %2025, %v1743_v48   ;;  %v1665_v48 = vld [vmem:[%s2433_s1 + $0x80] sm:$0xff] }
  0x64   :  { %1362 = vperm.xlu0 %2024, %v1742_v49  }
  0x65   :  { %1357 = vperm.xlu1 %2025, %v1741_v50  }
  0x68   :  { %1488 = vperm.xlu0 %2024, %v1753_v52  }
  0x8b   :  { %v57_v53 = vpop.permute.xlu0 %56  ;;  %v47_v55 = vpop.permute.xlu1 %46 }
  0x8f   :  { %v52_v59 = vpop.permute.xlu0 %51 }
  0x90   :  { %v42_v0 = vpop.permute.xlu1 %41 }
  0x93   :  { %v193_v9 = vpop.permute.xlu0 %192 }
  0x94   :  { %v188_v11 = vpop.permute.xlu1 %187 }
  0x97   :  { %v183_v15 = vpop.permute.xlu0 %182 }
  0x98   :  { %v178_v20 = vpop.permute.xlu1 %177 }
  0x9b   :  { %v325_v29 = vpop.permute.xlu0 %324 }
  0x9c   :  { %v320_v31 = vpop.permute.xlu1 %319 }
  0x9f   :  { %v315_v35 = vpop.permute.xlu0 %314 }
  0xa0   :  { %v310_v40 = vpop.permute.xlu1 %309 }
  0xa3   :  { %v456_v49 = vpop.permute.xlu0 %455 }
  0xa4   :  { %v451_v51 = vpop.permute.xlu1 %450 }
  0xd5   :  { %v1861_v54 = vpop.f32.mrf.mxu0 }
  0xd6   :  { %v148_v61 = vadd.f32 %v1861_v54, %v47_v55  ;;  %v446_v55 = vpop.permute.xlu0 %445 }
  0xd7   :  { %v142_v56 = vpop.f32.mrf.mxu0 }
  0xd8   :  { %v143_v1 = vadd.f32 %v142_v56, %v42_v0  ;;  %v162_v3 = vmax.f32 %v148_v61, 0.0 }
  0xd9   :  { %v1864_v57 = vpop.f32.mrf.mxu0 }
  0xda   :  { %v158_v58 = vadd.f32 %v1864_v57, %v57_v53  ;;  %v161_v4 = vmax.f32 %v143_v1, 0.0  ;;  %v1666_v1 = vld [vmem:[%s2433_s1 + $0x88] sm:$0xff] }
  0xdb   :  { %v152_v60 = vpop.f32.mrf.mxu0 }
  0xdc   :  { %v164_v62 = vmax.f32 %v158_v58, 0.0  ;;  %v153_v63 = vadd.f32 %v152_v60, %v52_v59  ;;  %v441_v60 = vpop.permute.xlu1 %440 }
  0xde   :  { %v163_v2 = vmax.f32 %v153_v63, 0.0  ;;  %1865 = vmatprep.subr.mxu1 %v164_v62 }
  0xdf   :  { %1866 = vmatpush3.msra.mxu1 %v164_v62 }
  0xe0   :  { %1867 = vmatprep.subr.mxu1 %v163_v2 }
  0xe1   :  { %1868 = vmatpush3.msra.mxu1 %v163_v2  ;;  %v1667_v2 = vld [vmem:[%s2433_s1 + $0x90] sm:$0xff] }
  0xe2   :  { %1869 = vmatprep.subr.mxu1 %v162_v3 }
  0xe3   :  { %1870 = vmatpush3.msra.mxu1 %v162_v3  ;;  %v1668_v3 = vld [vmem:[%s2433_s1 + $0x98] sm:$0xff] }
  0xe4   :  { %1871 = vmatprep.subr.mxu1 %v161_v4 }
  0xe5   :  { %1872 = vmatpush3.msra.mxu1 %v161_v4  ;;  %v1677_v4 = vld [vmem:[%s2433_s1 + $0xa0] sm:$0xff] }
  0xe6   :  { %1874 = vmatmul.mubr.msk.f32.vlgmr.msra.gmra.mxu1 %vm195_vm2, %v1630_v5  ;;  %v587_v5 = vpop.permute.xlu0 %586 }
  0xe7   :  { %1876 = vmatprep.mubr.msk.f32.mxu1 %vm195_vm2, %v1631_v6 }
  0xea   :  { %1877 = vmatmul.mubr.msk.f32.gmra.mxu1 %vm195_vm2, %v1632_v7  ;;  %v582_v7 = vpop.permute.xlu1 %581 }
  0xeb   :  { %1901 = vmatprep.mubr.msk.f32.mxu1 %vm195_vm2, %v1653_v28 }
 0x1a6   :  { %v1875_v10 = vpop.f32.mrf.mxu1 }
 0x1a7   :  { %v280_v17 = vadd.f32 %v1875_v10, %v183_v15 }
 0x1a8   :  { %v274_v12 = vpop.f32.mrf.mxu1 }
 0x1a9   :  { %v275_v21 = vadd.f32 %v274_v12, %v178_v20  ;;  %v294_v23 = vmax.f32 %v280_v17, 0.0 }
 0x1aa   :  { %v1878_v13 = vpop.f32.mrf.mxu1 }
 0x1ab   :  { %v290_v14 = vadd.f32 %v1878_v13, %v193_v9  ;;  %v293_v24 = vmax.f32 %v275_v21, 0.0  ;;  %v1678_v21 = vld [vmem:[%s2433_s1 + $0xa8] sm:$0xff] }
 0x1ac   :  { %v284_v16 = vpop.f32.mrf.mxu1 }
 0x1ad   :  { %v296_v18 = vmax.f32 %v290_v14, 0.0  ;;  %v285_v19 = vadd.f32 %v284_v16, %v188_v11  ;;  %v577_v11 = vpop.permute.xlu0 %576  ;;  %v572_v16 = vpop.permute.xlu1 %571 }
 0x1af   :  { %v295_v22 = vmax.f32 %v285_v19, 0.0  ;;  %1879 = vmatprep.subr.mxu0 %v296_v18 }
 0x1b0   :  { %1880 = vmatpush3.msra.mxu0 %v296_v18 }
 0x1b1   :  { %1881 = vmatprep.subr.mxu0 %v295_v22 }
 0x1b2   :  { %1882 = vmatpush3.msra.mxu0 %v295_v22  ;;  %v1679_v22 = vld [vmem:[%s2433_s1 + $0xb0] sm:$0xff] }
 0x1b3   :  { %1883 = vmatprep.subr.mxu0 %v294_v23 }
 0x1b4   :  { %1884 = vmatpush3.msra.mxu0 %v294_v23  ;;  %v1680_v23 = vld [vmem:[%s2433_s1 + $0xb8] sm:$0xff] }
 0x1b5   :  { %1885 = vmatprep.subr.mxu0 %v293_v24 }
 0x1b6   :  { %1886 = vmatpush3.msra.mxu0 %v293_v24  ;;  %v1689_v24 = vld [vmem:[%s2433_s1 + $0xc0] sm:$0xff] }
 0x1b7   :  { %1888 = vmatmul.mubr.msk.f32.vlgmr.msra.gmra.mxu0 %vm195_vm2, %v1642_v25  ;;  %v718_v25 = vpop.permute.xlu0 %717 }
 0x1b8   :  { %1890 = vmatprep.mubr.msk.f32.mxu0 %vm195_vm2, %v1643_v26 }
 0x1bb   :  { %1891 = vmatmul.mubr.msk.f32.gmra.mxu0 %vm195_vm2, %v1644_v27  ;;  %v713_v27 = vpop.permute.xlu1 %712 }
 0x1bc   :  { %1915 = vmatprep.mubr.msk.f32.mxu0 %vm195_vm2, %v1665_v48 }
 0x277   :  { %v1889_v30 = vpop.f32.mrf.mxu0 }
 0x278   :  { %v411_v37 = vadd.f32 %v1889_v30, %v315_v35 }
 0x279   :  { %v405_v32 = vpop.f32.mrf.mxu0 }
 0x27a   :  { %v406_v41 = vadd.f32 %v405_v32, %v310_v40  ;;  %v425_v43 = vmax.f32 %v411_v37, 0.0 }
 0x27b   :  { %v1892_v33 = vpop.f32.mrf.mxu0 }
 0x27c   :  { %v421_v34 = vadd.f32 %v1892_v33, %v325_v29  ;;  %v424_v44 = vmax.f32 %v406_v41, 0.0  ;;  %v1690_v41 = vld [vmem:[%s2433_s1 + $0xc8] sm:$0xff] }
 0x27d   :  { %v415_v36 = vpop.f32.mrf.mxu0 }
 0x27e   :  { %v427_v38 = vmax.f32 %v421_v34, 0.0  ;;  %v416_v39 = vadd.f32 %v415_v36, %v320_v31  ;;  %v708_v31 = vpop.permute.xlu0 %707  ;;  %v703_v36 = vpop.permute.xlu1 %702 }
 0x280   :  { %v426_v42 = vmax.f32 %v416_v39, 0.0  ;;  %1893 = vmatprep.subr.mxu1 %v427_v38 }
 0x281   :  { %1894 = vmatpush3.msra.mxu1 %v427_v38 }
 0x282   :  { %1895 = vmatprep.subr.mxu1 %v426_v42 }
 0x283   :  { %1896 = vmatpush3.msra.mxu1 %v426_v42  ;;  %v1691_v42 = vld [vmem:[%s2433_s1 + $0xd0] sm:$0xff] }
 0x284   :  { %1897 = vmatprep.subr.mxu1 %v425_v43 }
 0x285   :  { %1898 = vmatpush3.msra.mxu1 %v425_v43  ;;  %v1692_v43 = vld [vmem:[%s2433_s1 + $0xd8] sm:$0xff] }
 0x286   :  { %1899 = vmatprep.subr.mxu1 %v424_v44 }
 0x287   :  { %1900 = vmatpush3.msra.mxu1 %v424_v44  ;;  %v1701_v44 = vld [vmem:[%s2433_s1 + $0xe0] sm:$0xff] }
 0x288   :  { %1902 = vmatmul.mubr.msk.f32.vlgmr.msra.gmra.mxu1 %vm195_vm2, %v1654_v45  ;;  %v849_v45 = vpop.permute.xlu0 %848 }
 0x289   :  { %1904 = vmatprep.mubr.msk.f32.mxu1 %vm195_vm2, %v1655_v46 }
 0x28c   :  { %1905 = vmatmul.mubr.msk.f32.gmra.mxu1 %vm195_vm2, %v1656_v47  ;;  %v844_v47 = vpop.permute.xlu1 %843 }
 0x28d   :  { %1929 = vmatprep.mubr.msk.f32.mxu1 %vm195_vm2, %v1677_v4 }
 0x348   :  { %v1903_v50 = vpop.f32.mrf.mxu1 }
 0x349   :  { %v542_v57 = vadd.f32 %v1903_v50, %v446_v55 }
 0x34a   :  { %v536_v52 = vpop.f32.mrf.mxu1 }
 0x34b   :  { %v537_v61 = vadd.f32 %v536_v52, %v441_v60  ;;  %v556_v63 = vmax.f32 %v542_v57, 0.0 }
 0x34c   :  { %v1906_v53 = vpop.f32.mrf.mxu1 }
 0x34d   :  { %v552_v54 = vadd.f32 %v1906_v53, %v456_v49  ;;  %v555_v0 = vmax.f32 %v537_v61, 0.0  ;;  %v1702_v61 = vld [vmem:[%s2433_s1 + $0xe8] sm:$0xff] }
 0x34e   :  { %v546_v56 = vpop.f32.mrf.mxu1 }
 0x34f   :  { %v558_v58 = vmax.f32 %v552_v54, 0.0  ;;  %v547_v59 = vadd.f32 %v546_v56, %v451_v51  ;;  %v839_v51 = vpop.permute.xlu0 %838  ;;  %v834_v56 = vpop.permute.xlu1 %833 }
 0x351   :  { %v557_v62 = vmax.f32 %v547_v59, 0.0  ;;  %1907 = vmatprep.subr.mxu0 %v558_v58 }
 0x352   :  { %1908 = vmatpush3.msra.mxu0 %v558_v58 }
 0x353   :  { %1909 = vmatprep.subr.mxu0 %v557_v62 }
 0x354   :  { %1910 = vmatpush3.msra.mxu0 %v557_v62  ;;  %v1703_v62 = vld [vmem:[%s2433_s1 + $0xf0] sm:$0xff] }
 0x355   :  { %1911 = vmatprep.subr.mxu0 %v556_v63 }
 0x356   :  { %1912 = vmatpush3.msra.mxu0 %v556_v63  ;;  %v1704_v63 = vld [vmem:[%s2433_s1 + $0xf8] sm:$0xff] }
 0x357   :  { %1913 = vmatprep.subr.mxu0 %v555_v0 }
 0x358   :  { %1914 = vmatpush3.msra.mxu0 %v555_v0  ;;  %v1713_v0 = vld [vmem:[%s2433_s1 + $0x100] sm:$0xff] }
 0x359   :  { %1916 = vmatmul.mubr.msk.f32.vlgmr.msra.gmra.mxu0 %vm195_vm2, %v1666_v1  ;;  %v980_v1 = vpop.permute.xlu0 %979 }
 0x35a   :  { %1918 = vmatprep.mubr.msk.f32.mxu0 %vm195_vm2, %v1667_v2 }
 0x35d   :  { %1919 = vmatmul.mubr.msk.f32.gmra.mxu0 %vm195_vm2, %v1668_v3  ;;  %v975_v3 = vpop.permute.xlu1 %974 }
 0x35e   :  { %1943 = vmatprep.mubr.msk.f32.mxu0 %vm195_vm2, %v1689_v24 }
 0x419   :  { %v1917_v6 = vpop.f32.mrf.mxu0 }
 0x41a   :  { %v673_v13 = vadd.f32 %v1917_v6, %v577_v11 }
 0x41b   :  { %v667_v8 = vpop.f32.mrf.mxu0 }
 0x41c   :  { %v668_v17 = vadd.f32 %v667_v8, %v572_v16  ;;  %v687_v19 = vmax.f32 %v673_v13, 0.0 }
 0x41d   :  { %v1920_v9 = vpop.f32.mrf.mxu0 }
 0x41e   :  { %v683_v10 = vadd.f32 %v1920_v9, %v587_v5  ;;  %v686_v20 = vmax.f32 %v668_v17, 0.0  ;;  %v1714_v17 = vld [vmem:[%s2433_s1 + $0x108] sm:$0xff] }
 0x41f   :  { %v677_v12 = vpop.f32.mrf.mxu0 }
 0x420   :  { %v689_v14 = vmax.f32 %v683_v10, 0.0  ;;  %v678_v15 = vadd.f32 %v677_v12, %v582_v7  ;;  %v970_v7 = vpop.permute.xlu0 %969  ;;  %v965_v12 = vpop.permute.xlu1 %964 }
 0x422   :  { %v688_v18 = vmax.f32 %v678_v15, 0.0  ;;  %1921 = vmatprep.subr.mxu1 %v689_v14 }
 0x423   :  { %1922 = vmatpush3.msra.mxu1 %v689_v14 }
 0x424   :  { %1923 = vmatprep.subr.mxu1 %v688_v18 }
 0x425   :  { %1924 = vmatpush3.msra.mxu1 %v688_v18  ;;  %v1715_v18 = vld [vmem:[%s2433_s1 + $0x110] sm:$0xff] }
 0x426   :  { %1925 = vmatprep.subr.mxu1 %v687_v19 }
 0x427   :  { %1926 = vmatpush3.msra.mxu1 %v687_v19  ;;  %v1716_v19 = vld [vmem:[%s2433_s1 + $0x118] sm:$0xff] }
 0x428   :  { %1927 = vmatprep.subr.mxu1 %v686_v20 }
 0x429   :  { %1928 = vmatpush3.msra.mxu1 %v686_v20  ;;  %v1725_v20 = vld [vmem:[%s2433_s1 + $0x120] sm:$0xff] }
 0x42a   :  { %1930 = vmatmul.mubr.msk.f32.vlgmr.msra.gmra.mxu1 %vm195_vm2, %v1678_v21  ;;  %v1111_v21 = vpop.permute.xlu0 %1110 }
 0x42b   :  { %1932 = vmatprep.mubr.msk.f32.mxu1 %vm195_vm2, %v1679_v22 }
 0x42e   :  { %1933 = vmatmul.mubr.msk.f32.gmra.mxu1 %vm195_vm2, %v1680_v23  ;;  %v1106_v23 = vpop.permute.xlu1 %1105 }
 0x42f   :  { %1957 = vmatprep.mubr.msk.f32.mxu1 %vm195_vm2, %v1701_v44 }
 0x4ea   :  { %v1931_v26 = vpop.f32.mrf.mxu1 }
 0x4eb   :  { %v804_v33 = vadd.f32 %v1931_v26, %v708_v31 }
 0x4ec   :  { %v798_v28 = vpop.f32.mrf.mxu1 }
 0x4ed   :  { %v799_v37 = vadd.f32 %v798_v28, %v703_v36  ;;  %v818_v39 = vmax.f32 %v804_v33, 0.0 }
 0x4ee   :  { %v1934_v29 = vpop.f32.mrf.mxu1 }
 0x4ef   :  { %v814_v30 = vadd.f32 %v1934_v29, %v718_v25  ;;  %v817_v40 = vmax.f32 %v799_v37, 0.0  ;;  %v1726_v37 = vld [vmem:[%s2433_s1 + $0x128] sm:$0xff] }
 0x4f0   :  { %v808_v32 = vpop.f32.mrf.mxu1 }
 0x4f1   :  { %v820_v34 = vmax.f32 %v814_v30, 0.0  ;;  %v809_v35 = vadd.f32 %v808_v32, %v713_v27  ;;  %v1101_v27 = vpop.permute.xlu0 %1100  ;;  %v1096_v32 = vpop.permute.xlu1 %1095 }
 0x4f3   :  { %v819_v38 = vmax.f32 %v809_v35, 0.0  ;;  %1935 = vmatprep.subr.mxu0 %v820_v34 }
 0x4f4   :  { %1936 = vmatpush3.msra.mxu0 %v820_v34 }
 0x4f5   :  { %1937 = vmatprep.subr.mxu0 %v819_v38 }
 0x4f6   :  { %1938 = vmatpush3.msra.mxu0 %v819_v38  ;;  %v1727_v38 = vld [vmem:[%s2433_s1 + $0x130] sm:$0xff] }
 0x4f7   :  { %1939 = vmatprep.subr.mxu0 %v818_v39 }
 0x4f8   :  { %1940 = vmatpush3.msra.mxu0 %v818_v39  ;;  %v1728_v39 = vld [vmem:[%s2433_s1 + $0x138] sm:$0xff] }
 0x4f9   :  { %1941 = vmatprep.subr.mxu0 %v817_v40 }
 0x4fa   :  { %1942 = vmatpush3.msra.mxu0 %v817_v40  ;;  %v1737_v40 = vld [vmem:[%s2433_s1 + $0x140] sm:$0xff] }
 0x4fb   :  { %1944 = vmatmul.mubr.msk.f32.vlgmr.msra.gmra.mxu0 %vm195_vm2, %v1690_v41  ;;  %v1242_v41 = vpop.permute.xlu0 %1241 }
 0x4fc   :  { %1946 = vmatprep.mubr.msk.f32.mxu0 %vm195_vm2, %v1691_v42 }
 0x4ff   :  { %1947 = vmatmul.mubr.msk.f32.gmra.mxu0 %vm195_vm2, %v1692_v43  ;;  %v1237_v43 = vpop.permute.xlu1 %1236 }
 0x500   :  { %1971 = vmatprep.mubr.msk.f32.mxu0 %vm195_vm2, %v1713_v0 }
 0x5bb   :  { %v1945_v46 = vpop.f32.mrf.mxu0 }
 0x5bc   :  { %v935_v53 = vadd.f32 %v1945_v46, %v839_v51 }
 0x5bd   :  { %v929_v48 = vpop.f32.mrf.mxu0 }
 0x5be   :  { %v930_v57 = vadd.f32 %v929_v48, %v834_v56  ;;  %v949_v59 = vmax.f32 %v935_v53, 0.0 }
 0x5bf   :  { %v1948_v49 = vpop.f32.mrf.mxu0 }
 0x5c0   :  { %v945_v50 = vadd.f32 %v1948_v49, %v849_v45  ;;  %v948_v60 = vmax.f32 %v930_v57, 0.0  ;;  %v1738_v57 = vld [vmem:[%s2433_s1 + $0x148] sm:$0xff] }
 0x5c1   :  { %v939_v52 = vpop.f32.mrf.mxu0 }
 0x5c2   :  { %v951_v54 = vmax.f32 %v945_v50, 0.0  ;;  %v940_v55 = vadd.f32 %v939_v52, %v844_v47  ;;  %v1232_v47 = vpop.permute.xlu0 %1231  ;;  %v1227_v52 = vpop.permute.xlu1 %1226 }
 0x5c4   :  { %v950_v58 = vmax.f32 %v940_v55, 0.0  ;;  %1949 = vmatprep.subr.mxu1 %v951_v54 }
 0x5c5   :  { %1950 = vmatpush3.msra.mxu1 %v951_v54 }
 0x5c6   :  { %1951 = vmatprep.subr.mxu1 %v950_v58 }
 0x5c7   :  { %1952 = vmatpush3.msra.mxu1 %v950_v58  ;;  %v1739_v58 = vld [vmem:[%s2433_s1 + $0x150] sm:$0xff] }
 0x5c8   :  { %1953 = vmatprep.subr.mxu1 %v949_v59 }
 0x5c9   :  { %1954 = vmatpush3.msra.mxu1 %v949_v59  ;;  %v1740_v59 = vld [vmem:[%s2433_s1 + $0x158] sm:$0xff] }
 0x5ca   :  { %1955 = vmatprep.subr.mxu1 %v948_v60 }
 0x5cb   :  { %1956 = vmatpush3.msra.mxu1 %v948_v60  ;;  %v1749_v60 = vld [vmem:[%s2433_s1 + $0x160] sm:$0xff] }
 0x5cc   :  { %1958 = vmatmul.mubr.msk.f32.vlgmr.msra.gmra.mxu1 %vm195_vm2, %v1702_v61  ;;  %v1373_v61 = vpop.permute.xlu0 %1372 }
 0x5cd   :  { %1960 = vmatprep.mubr.msk.f32.mxu1 %vm195_vm2, %v1703_v62 }
 0x5d0   :  { %1961 = vmatmul.mubr.msk.f32.gmra.mxu1 %vm195_vm2, %v1704_v63  ;;  %v1368_v63 = vpop.permute.xlu1 %1367 }
 0x5d1   :  { %1985 = vmatprep.mubr.msk.f32.mxu1 %vm195_vm2, %v1725_v20 }
 0x68c   :  { %v1959_v2 = vpop.f32.mrf.mxu1 }
 0x68d   :  { %v1066_v9 = vadd.f32 %v1959_v2, %v970_v7 }
 0x68e   :  { %v1060_v4 = vpop.f32.mrf.mxu1 }
 0x68f   :  { %v1061_v13 = vadd.f32 %v1060_v4, %v965_v12  ;;  %v1080_v15 = vmax.f32 %v1066_v9, 0.0 }
 0x690   :  { %v1962_v5 = vpop.f32.mrf.mxu1 }
 0x691   :  { %v1076_v6 = vadd.f32 %v1962_v5, %v980_v1  ;;  %v1079_v16 = vmax.f32 %v1061_v13, 0.0  ;;  %v1750_v13 = vld [vmem:[%s2433_s1 + $0x168] sm:$0xff] }
 0x692   :  { %v1070_v8 = vpop.f32.mrf.mxu1 }
 0x693   :  { %v1082_v10 = vmax.f32 %v1076_v6, 0.0  ;;  %v1071_v11 = vadd.f32 %v1070_v8, %v975_v3  ;;  %v1363_v3 = vpop.permute.xlu0 %1362  ;;  %v1358_v8 = vpop.permute.xlu1 %1357 }
 0x695   :  { %v1081_v14 = vmax.f32 %v1071_v11, 0.0  ;;  %1963 = vmatprep.subr.mxu0 %v1082_v10 }
 0x696   :  { %1964 = vmatpush3.msra.mxu0 %v1082_v10 }
 0x697   :  { %1965 = vmatprep.subr.mxu0 %v1081_v14 }
 0x698   :  { %1966 = vmatpush3.msra.mxu0 %v1081_v14  ;;  %v1751_v14 = vld [vmem:[%s2433_s1 + $0x170] sm:$0xff] }
 0x699   :  { %1967 = vmatprep.subr.mxu0 %v1080_v15 }
 0x69a   :  { %1968 = vmatpush3.msra.mxu0 %v1080_v15  ;;  %v1752_v15 = vld [vmem:[%s2433_s1 + $0x178] sm:$0xff]  ;;  %s2050_s1 = scalar_lea.vmem %s1616_s2, 32 }
 0x69b   :  { %1969 = vmatprep.subr.mxu0 %v1079_v16  ;;  %p2051_p5 = scmp.ne.s32.totalorder %s1616_s2, %s2050_s1  ;;  %p2056_p7 = scmp.lt.s32.totalorder %s2050_s1, %s2050_s1 }
 0x69c   :  { %1970 = vmatpush3.msra.mxu0 %v1079_v16 }
 0x69d   :  { %1972 = vmatmul.mubr.msk.f32.vlgmr.msra.gmra.mxu0 %vm195_vm2, %v1714_v17  ;;  %v1489_v17 = vpop.permute.xlu0 %1488  ;;  %p2057_p8 = por %p2056_p7, %p2055_p6 }
 0x69e   :  { %1974 = vmatprep.mubr.msk.f32.mxu0 %vm195_vm2, %v1715_v18 }
 0x69f   :  { %p2058_p9 = pnand %p2057_p8, %p2051_p5 }
 0x6a1   :  { %1975 = vmatmul.mubr.msk.f32.gmra.mxu0 %vm195_vm2, %v1716_v19 }
 0x6a2   :  { %1999 = vmatprep.mubr.msk.f32.mxu0 %vm195_vm2, %v1737_v40 }
 0x75d   :  { %v1973_v22 = vpop.f32.mrf.mxu0 }
 0x75e   :  { %v1197_v29 = vadd.f32 %v1973_v22, %v1101_v27 }
 0x75f   :  { %v1191_v24 = vpop.f32.mrf.mxu0 }
 0x760   :  { %v1192_v33 = vadd.f32 %v1191_v24, %v1096_v32  ;;  %v1211_v35 = vmax.f32 %v1197_v29, 0.0 }
 0x761   :  { %v1976_v25 = vpop.f32.mrf.mxu0 }
 0x762   :  { %v1207_v26 = vadd.f32 %v1976_v25, %v1111_v21  ;;  %v1210_v36 = vmax.f32 %v1192_v33, 0.0 }
 0x763   :  { %v1201_v28 = vpop.f32.mrf.mxu0 }
 0x764   :  { %v1213_v30 = vmax.f32 %v1207_v26, 0.0  ;;  %v1202_v31 = vadd.f32 %v1201_v28, %v1106_v23 }
 0x766   :  { %v1212_v34 = vmax.f32 %v1202_v31, 0.0  ;;  %1977 = vmatprep.subr.mxu1 %v1213_v30 }
 0x767   :  { %1978 = vmatpush3.msra.mxu1 %v1213_v30 }
 0x768   :  { %1979 = vmatprep.subr.mxu1 %v1212_v34 }
 0x769   :  { %1980 = vmatpush3.msra.mxu1 %v1212_v34 }
 0x76a   :  { %1981 = vmatprep.subr.mxu1 %v1211_v35 }
 0x76b   :  { %1982 = vmatpush3.msra.mxu1 %v1211_v35 }
 0x76c   :  { %1983 = vmatprep.subr.mxu1 %v1210_v36 }
 0x76d   :  { %1984 = vmatpush3.msra.mxu1 %v1210_v36 }
 0x76e   :  { %1986 = vmatmul.mubr.msk.f32.vlgmr.msra.gmra.mxu1 %vm195_vm2, %v1726_v37 }
 0x76f   :  { %1988 = vmatprep.mubr.msk.f32.mxu1 %vm195_vm2, %v1727_v38 }
 0x772   :  { %1989 = vmatmul.mubr.msk.f32.gmra.mxu1 %vm195_vm2, %v1728_v39 }
 0x773   :  { %2013 = vmatprep.mubr.msk.f32.mxu1 %vm195_vm2, %v1749_v60 }
 0x82e   :  { %v1987_v42 = vpop.f32.mrf.mxu1 }
 0x82f   :  { %v1328_v49 = vadd.f32 %v1987_v42, %v1232_v47 }
 0x830   :  { %v1322_v44 = vpop.f32.mrf.mxu1 }
 0x831   :  { %v1323_v53 = vadd.f32 %v1322_v44, %v1227_v52  ;;  %v1342_v55 = vmax.f32 %v1328_v49, 0.0 }
 0x832   :  { %v1990_v45 = vpop.f32.mrf.mxu1 }
 0x833   :  { %v1338_v46 = vadd.f32 %v1990_v45, %v1242_v41  ;;  %v1341_v56 = vmax.f32 %v1323_v53, 0.0 }
 0x834   :  { %v1332_v48 = vpop.f32.mrf.mxu1 }
 0x835   :  { %v1344_v50 = vmax.f32 %v1338_v46, 0.0  ;;  %v1333_v51 = vadd.f32 %v1332_v48, %v1237_v43 }
 0x837   :  { %v1343_v54 = vmax.f32 %v1333_v51, 0.0  ;;  %1991 = vmatprep.subr.mxu0 %v1344_v50 }
 0x838   :  { %1992 = vmatpush3.msra.mxu0 %v1344_v50 }
 0x839   :  { %1993 = vmatprep.subr.mxu0 %v1343_v54 }
 0x83a   :  { %1994 = vmatpush3.msra.mxu0 %v1343_v54 }
 0x83b   :  { %1995 = vmatprep.subr.mxu0 %v1342_v55 }
 0x83c   :  { %1996 = vmatpush3.msra.mxu0 %v1342_v55 }
 0x83d   :  { %1997 = vmatprep.subr.mxu0 %v1341_v56 }
 0x83e   :  { %1998 = vmatpush3.msra.mxu0 %v1341_v56 }
 0x83f   :  { %2000 = vmatmul.mubr.msk.f32.vlgmr.msra.gmra.mxu0 %vm195_vm2, %v1738_v57 }
 0x840   :  { %2002 = vmatprep.mubr.msk.f32.mxu0 %vm195_vm2, %v1739_v58 }
 0x843   :  { %2003 = vmatmul.mubr.msk.f32.gmra.mxu0 %vm195_vm2, %v1740_v59 }
 0x8ff   :  { %v2001_v62 = vpop.f32.mrf.mxu0 }
 0x900   :  { %v1459_v5 = vadd.f32 %v2001_v62, %v1363_v3 }
 0x901   :  { %v1453_v0 = vpop.f32.mrf.mxu0 }
 0x902   :  { %v1454_v9 = vadd.f32 %v1453_v0, %v1358_v8  ;;  %v1473_v11 = vmax.f32 %v1459_v5, 0.0 }
 0x903   :  { %v2004_v1 = vpop.f32.mrf.mxu0 }
 0x904   :  { %v1469_v2 = vadd.f32 %v2004_v1, %v1373_v61  ;;  %v1472_v12 = vmax.f32 %v1454_v9, 0.0 }
 0x905   :  { %v1463_v4 = vpop.f32.mrf.mxu0 }
 0x906   :  { %v1475_v6 = vmax.f32 %v1469_v2, 0.0  ;;  %v1464_v7 = vadd.f32 %v1463_v4, %v1368_v63 }
 0x908   :  { %v1474_v10 = vmax.f32 %v1464_v7, 0.0  ;;  %2005 = vmatprep.subr.mxu1 %v1475_v6 }
 0x909   :  { %2006 = vmatpush3.msra.mxu1 %v1475_v6 }
 0x90a   :  { %2007 = vmatprep.subr.mxu1 %v1474_v10 }
 0x90b   :  { %2008 = vmatpush3.msra.mxu1 %v1474_v10 }
 0x90c   :  { %2009 = vmatprep.subr.mxu1 %v1473_v11 }
 0x90d   :  { %2010 = vmatpush3.msra.mxu1 %v1473_v11 }
 0x90e   :  { %2011 = vmatprep.subr.mxu1 %v1472_v12 }
 0x90f   :  { %2012 = vmatpush3.msra.mxu1 %v1472_v12 }
 0x910   :  { %2014 = vmatmul.mubr.msk.f32.vlgmr.msra.gmra.mxu1 %vm195_vm2, %v1750_v13 }
 0x911   :  { %2016 = vmatprep.mubr.msk.f32.mxu1 %vm195_vm2, %v1751_v14 }
 0x914   :  { %2017 = vmatmul.mubr.msk.f32.gmra.mxu1 %vm195_vm2, %v1752_v15 }
 0x9d0   :  { %v2015_v16 = vpop.f32.mrf.mxu1 }
 0x9d2   :  { %v1581_v18 = vpop.f32.mrf.mxu1 }
 0x9d3   :  { %v1582_v19 = vadd.f32 %v1581_v18, %v1489_v17 }
 0x9d4   :  { %v2018_v20 = vpop.f32.mrf.mxu1 }
 0x9d5   :  { %v1598_v21 = vrot.slane %v1582_v19, 7 }
 0x9d6   :  { %v1590_v22 = vpop.f32.mrf.mxu1 }
 0x9d7   :  { %v1600_v23 = vsub.f32 %v1582_v19, %v1598_v21 }
 0x9d9   :  { %v1601_v24 = vmul.f32 1.442695, %v1600_v23 }
 0x9db   :  { %2026 = vpow2.f32 %v1601_v24 }
 0x9e8   :  { %v2027_v25 = vpop.eup %2026 }
 0x9e9   :  { %v1603_v26 = vadd.f32 1.0, %v2027_v25 }
 0x9eb   :  { %2028 = vrcp.f32 %v1603_v26 }
 0x9f8   :  { %v2029_v27 = vpop.eup %2028 }
 0x9f9   :  { %1606 = vst [vmem:[#allocation5 - $0x1] sm:$0x2] %v2029_v27  ;;  %v1607_v28 = vsub.f32 1.0, %v2029_v27 }
 0x9fb   :  { %1608 = vst [vmem:[#allocation5] sm:$0x2] %v1607_v28 }
 0x9fc   :  { %2061 = shalt.err (!%p2058_p9)
}
 0x9fd   :  { %1618 = dma.vmem_to_hbm [thread:$0]  %s1616_s2, 32, %s2435_s3, [#allocation4]  }
 0x9fe   :  { %2072 = dma.done.wait [#allocation4], 32  }
 0x9ff   :  { %2073 = vsyncadd [#allocation4], 4294967264 }
 0xa00   :  { %1622 = vsyncpa [#allocation3], 1 }
 0xa01   :  { %1623 = vsyncpa [#allocation4], 1 }

</bundles_post_ra>
